<compile_context>
chip_gen: v5e
topology: v5e:2x2
jax: 0.10.0
libtpu: 0.0.40
codegen_flags: <defaults>
</compile_context>

<pallas_src>
import functools

import jax
import jax.numpy as jnp
from jax import lax
from jax.experimental import pallas as pl
from jax.experimental.pallas import tpu as pltpu

_SMOOTH_L1_BETA = 1.0
_HUBER_DELTA = 1.0
_RESERVE_BYTES = 8 * 1024 * 1024  # headroom for strip temporaries / partial outputs


def _cdiv(a, b):
    return -(-a // b)


def _round_up(x, m):
    return ((x + m - 1) // m) * m


def _elementwise_loss(p, t, loss_type):
    d = p - t
    if loss_type == "mse":
        return d * d
    if loss_type == "l1":
        return jnp.abs(d)
    if loss_type == "smooth_l1":
        ad = jnp.abs(d)
        return jnp.where(ad < _SMOOTH_L1_BETA,
                         0.5 * d * d / _SMOOTH_L1_BETA,
                         ad - 0.5 * _SMOOTH_L1_BETA)
    if loss_type == "huber":
        ad = jnp.abs(d)
        return jnp.where(ad < _HUBER_DELTA,
                         0.5 * d * d,
                         _HUBER_DELTA * (ad - 0.5 * _HUBER_DELTA))
    raise ValueError(f"unknown loss_type: {loss_type}")


# ------------------------- hardware-aware sizing -------------------------

@functools.lru_cache(maxsize=None)
def _vmem_budget_and_target_block():
    """(vmem_limit_bytes, target bytes per pipelined input block), generation aware."""
    cap = 64 * 1024 * 1024  # conservative default (assume v7x-class 64 MiB VMEM)
    try:
        info = pltpu.get_tpu_info()
        c = getattr(info, "vmem_capacity_bytes", None)
        if c:
            cap = int(c)
    except Exception:
        pass
    if cap >= 100 * 1024 * 1024:                    # v5e / v6e: 128 MiB physical VMEM
        return 64 * 1024 * 1024, 8 * 1024 * 1024
    return 48 * 1024 * 1024, 6 * 1024 * 1024        # v7x: 64 MiB physical VMEM


def _choose_block_rows(rows, row_bytes_main, row_bytes_all, vmem_budget, target_block):
    """Rows per grid block: < 8 only when rows < 8, otherwise a multiple of 8."""
    if rows <= 8:
        return rows
    max_rows = (rows // 8) * 8
    bR = target_block // max(row_bytes_main, 1)
    clamp = max(vmem_budget - _RESERVE_BYTES, 4 * 1024 * 1024) // max(2 * row_bytes_all, 1)
    bR = min(bR, clamp, max_rows)
    if rows >= 16:                                  # keep >=2 blocks (v7x has 2 TCs)
        bR = min(bR, _round_up(_cdiv(rows, 2), 8))
    if bR >= 1024:
        bR = (bR // 512) * 512
    else:
        bR = max(8, (bR // 8) * 8)
    return bR


def _pick_strip_rows(block_rows):
    if block_rows <= 512:
        return block_rows
    for cand in (512, 256, 128, 64, 32, 16, 8):
        if block_rows % cand == 0:
            return cand
    return 8


def _flat_layout(shape):
    """Lane-dense flat layout for the mask-free paths (free reshape), else natural."""
    B, S, D = shape
    N = B * S * D
    for lane in (512, 256, 128):
        if N % lane == 0:
            return N // lane, lane
    return B * S, D


# ------------------------- in-kernel helpers -------------------------

def _fold_lanes(x):
    """(h, W) -> (h, min(W,128)) by adding 128-lane column slices (VALU only)."""
    w = x.shape[1]
    if w <= 128:
        return x
    if w % 128 == 0:
        acc = x[:, 0:128]
        for c in range(1, w // 128):
            acc = acc + x[:, c * 128:(c + 1) * 128]
        return acc
    return jnp.sum(x, axis=1, keepdims=True)        # rare: odd width > 128


def _fold_rows(x):
    """(h, w) -> (min(h,8), w) by adding 8-row strips (h is <=8 or a multiple of 8)."""
    h = x.shape[0]
    if h <= 8:
        return x
    acc = x[0:8, :]
    for j in range(1, h // 8):
        acc = acc + x[j * 8:(j + 1) * 8, :]
    return acc


def _sum_body(pred_ref, tgt_ref, mask_ref, part_ref, *, loss_type, strip_rows,
              rows_total, ragged):
    block_rows, width = pred_ref.shape
    nstrips = block_rows // strip_rows
    pw = 1 if (width > 128 and width % 128 != 0) else min(width, 128)
    pr = min(strip_rows, 8)
    blk = pl.program_id(0)

    def strip_partial(s):
        if strip_rows >= 8:
            start = pl.multiple_of(s * strip_rows, 8)
        else:
            start = s * strip_rows
        sl = pl.ds(start, strip_rows)
        p = pred_ref[sl, :].astype(jnp.float32)
        t = tgt_ref[sl, :].astype(jnp.float32)
        e = _elementwise_loss(p, t, loss_type)
        if mask_ref is not None:
            e = e * mask_ref[sl, :].astype(jnp.float32)
        if ragged:
            row = (blk * block_rows + s * strip_rows
                   + lax.broadcasted_iota(jnp.int32, e.shape, 0))
            e = jnp.where(row < rows_total, e, 0.0)
        return _fold_rows(_fold_lanes(e))

    acc = lax.fori_loop(0, nstrips,
                        lambda s, a: a + strip_partial(s),
                        jnp.zeros((pr, pw), jnp.float32))

    if pr == 8 and pw == 128:
        part_ref[...] = acc                          # single unmasked full-vreg store
    else:
        part_ref[...] = jnp.zeros(part_ref.shape, part_ref.dtype)
        part_ref[0:pr, 0:pw] = acc


def _elem_body(pred_ref, tgt_ref, mask_ref, out_ref, *, loss_type, strip_rows):
    block_rows = pred_ref.shape[0]
    nstrips = block_rows // strip_rows

    def body(s, carry):
        if strip_rows >= 8:
            start = pl.multiple_of(s * strip_rows, 8)
        else:
            start = s * strip_rows
        sl = pl.ds(start, strip_rows)
        p = pred_ref[sl, :].astype(jnp.float32)
        t = tgt_ref[sl, :].astype(jnp.float32)
        e = _elementwise_loss(p, t, loss_type)
        if mask_ref is not None:
            e = e * mask_ref[sl, :].astype(jnp.float32)
        out_ref[sl, :] = e.astype(out_ref.dtype)
        return carry

    lax.fori_loop(0, nstrips, body, jnp.int32(0))


# ------------------------- kernel entry points -------------------------

def _sum_kernel(pred_ref, tgt_ref, part_ref, *, loss_type, strip_rows, rows_total, ragged):
    _sum_body(pred_ref, tgt_ref, None, part_ref, loss_type=loss_type,
              strip_rows=strip_rows, rows_total=rows_total, ragged=ragged)


def _masked_sum_kernel(pred_ref, tgt_ref, mask_ref, part_ref, *, loss_type, strip_rows,
                       rows_total, ragged):
    _sum_body(pred_ref, tgt_ref, mask_ref, part_ref, loss_type=loss_type,
              strip_rows=strip_rows, rows_total=rows_total, ragged=ragged)


def _elem_kernel(pred_ref, tgt_ref, out_ref, *, loss_type, strip_rows):
    _elem_body(pred_ref, tgt_ref, None, out_ref, loss_type=loss_type, strip_rows=strip_rows)


def _masked_elem_kernel(pred_ref, tgt_ref, mask_ref, out_ref, *, loss_type, strip_rows):
    _elem_body(pred_ref, tgt_ref, mask_ref, out_ref, loss_type=loss_type, strip_rows=strip_rows)


# ------------------------- pallas_call wrappers -------------------------

def _sum_call(pred, tgt, mask, loss_type):
    """Sum of (optionally masked) elementwise loss, as an f32 scalar."""
    B, S, D = pred.shape
    N = B * S * D
    itemsize = jnp.dtype(pred.dtype).itemsize
    vmem_budget, target_block = _vmem_budget_and_target_block()

    if mask is None:
        rows, width = _flat_layout(pred.shape)       # lane-dense flat layout, free reshape
    else:
        # TODO(synk): lane-dense repack (rows, D) -> (rows/k, k*D) for masked small-D
        # inputs to recover the remaining lane-padding waste in VMEM.
        rows, width = B * S, D

    p2 = pred.reshape(rows, width)
    t2 = tgt.reshape(rows, width)
    operands = [p2, t2]

    row_in = _round_up(width, 128) * itemsize        # lane-padded VMEM bytes per row
    row_all = 2 * row_in
    bytes_accessed = 2 * N * itemsize
    if mask is not None:
        m2 = mask.reshape(rows, 1)
        if m2.dtype != jnp.float32:
            m2 = m2.astype(jnp.float32)
        operands.append(m2)
        row_all += 128 * 4                           # mask row is lane-padded to 128 f32
        bytes_accessed += rows * 4

    bR = _choose_block_rows(rows, row_in, row_all, vmem_budget, target_block)
    strip = _pick_strip_rows(bR)
    nb = _cdiv(rows, bR)
    ragged = (rows % bR) != 0

    io_spec = pl.BlockSpec((bR, width), lambda i: (i, 0))
    in_specs = [io_spec, io_spec]
    if mask is not None:
        in_specs.append(pl.BlockSpec((bR, 1), lambda i: (i, 0)))
        kern = functools.partial(_masked_sum_kernel, loss_type=loss_type,
                                 strip_rows=strip, rows_total=rows, ragged=ragged)
    else:
        kern = functools.partial(_sum_kernel, loss_type=loss_type,
                                 strip_rows=strip, rows_total=rows, ragged=ragged)

    part = pl.pallas_call(
        kern,
        out_shape=jax.ShapeDtypeStruct((nb * 8, 128), jnp.float32),
        grid_spec=pltpu.PrefetchScalarGridSpec(
            num_scalar_prefetch=0,
            grid=(nb,),
            in_specs=in_specs,
            out_specs=pl.BlockSpec((8, 128), lambda i: (i, 0)),
        ),
        compiler_params=pltpu.CompilerParams(
            dimension_semantics=("parallel",),
            vmem_limit_bytes=vmem_budget),
        cost_estimate=pl.CostEstimate(flops=4 * N, transcendentals=0,
                                      bytes_accessed=bytes_accessed),
    )(*operands)
    return jnp.sum(part)


def _elem_call(pred, tgt, mask, loss_type):
    """Per-element (optionally masked) loss, shape [B, S, D] (reduction='none')."""
    B, S, D = pred.shape
    N = B * S * D
    itemsize = jnp.dtype(pred.dtype).itemsize
    vmem_budget, target_block = _vmem_budget_and_target_block()

    if mask is None:
        rows, width = _flat_layout(pred.shape)
    else:
        rows, width = B * S, D

    p2 = pred.reshape(rows, width)
    t2 = tgt.reshape(rows, width)
    operands = [p2, t2]

    row_in = _round_up(width, 128) * itemsize
    row_all = 3 * row_in                             # pred + tgt + out streams
    bytes_accessed = 3 * N * itemsize
    if mask is not None:
        m2 = mask.reshape(rows, 1)
        if m2.dtype != jnp.float32:
            m2 = m2.astype(jnp.float32)
        operands.append(m2)
        row_all += 128 * 4
        bytes_accessed += rows * 4

    bR = _choose_block_rows(rows, row_in, row_all, vmem_budget, target_block)
    strip = _pick_strip_rows(bR)
    nb = _cdiv(rows, bR)

    io_spec = pl.BlockSpec((bR, width), lambda i: (i, 0))
    in_specs = [io_spec, io_spec]
    if mask is not None:
        in_specs.append(pl.BlockSpec((bR, 1), lambda i: (i, 0)))
        kern = functools.partial(_masked_elem_kernel, loss_type=loss_type, strip_rows=strip)
    else:
        kern = functools.partial(_elem_kernel, loss_type=loss_type, strip_rows=strip)

    out = pl.pallas_call(
        kern,
        out_shape=jax.ShapeDtypeStruct((rows, width), pred.dtype),
        grid_spec=pltpu.PrefetchScalarGridSpec(
            num_scalar_prefetch=0,
            grid=(nb,),
            in_specs=in_specs,
            out_specs=io_spec,
        ),
        compiler_params=pltpu.CompilerParams(
            dimension_semantics=("parallel",),
            vmem_limit_bytes=vmem_budget),
        cost_estimate=pl.CostEstimate(flops=4 * N, transcendentals=0,
                                      bytes_accessed=bytes_accessed),
    )(*operands)
    return out.reshape(B, S, D)


def reconstruction_loss(predictions, targets, mask=None,
                        loss_type: str = "mse", reduction: str = "mean"):
    """JAX/Pallas equivalent of ReconstructionLoss.forward.

    predictions, targets: [B, S, D]; mask (optional): [B, S].
    Returns a scalar for reduction in {"mean", "sum"}, or [B, S, D] for "none".
    """
    if loss_type not in ("mse", "l1", "smooth_l1", "huber"):
        raise ValueError(f"unknown loss_type: {loss_type}")
    if reduction not in ("mean", "sum", "none"):
        raise ValueError(f"unknown reduction: {reduction}")

    if reduction == "none":
        return _elem_call(predictions, targets, mask, loss_type)

    total = _sum_call(predictions, targets, mask, loss_type)
    if reduction == "sum":
        return total

    B, S, D = predictions.shape
    if mask is None:
        denom = jnp.float32(B * S) * D + 1e-8
    else:
        denom = jnp.sum(mask.astype(jnp.float32)) * D + 1e-8
    return total / denom


class ReconstructionLoss:
    """Functional stand-in for the PyTorch module."""

    def __init__(self, loss_type: str = "mse", reduction: str = "mean"):
        self.loss_type = loss_type
        self.reduction = reduction

    def __call__(self, predictions, targets, mask=None):
        return reconstruction_loss(predictions, targets, mask,
                                   loss_type=self.loss_type, reduction=self.reduction)


# ------------------------- reference + test -------------------------

def _reference_loss(pred, tgt, mask, loss_type, reduction):
    e = _elementwise_loss(pred.astype(jnp.float32), tgt.astype(jnp.float32), loss_type)
    m = jnp.ones(pred.shape[:2], jnp.float32) if mask is None else mask.astype(jnp.float32)
    e = e * m[..., None]
    if reduction == "none":
        return e
    if reduction == "sum":
        return jnp.sum(e)
    return jnp.sum(e) / (jnp.sum(m) * pred.shape[-1] + 1e-8)


if __name__ == "__main__":
    key = jax.random.PRNGKey(0)
    ok = True

    # (shape, loss types exercised at that shape)
    configs = [
        ((2, 8, 32), ("mse", "l1", "smooth_l1", "huber")),   # flat lane-dense path
        ((4, 16, 128), ("l1",)),                             # multi-block flat path
        ((2, 7, 48), ("smooth_l1",)),                        # ragged natural layout
    ]

    for (B, S, D), loss_types in configs:
        k1, k2, k3, key = jax.random.split(key, 4)
        predictions = jax.random.normal(k1, (B, S, D), dtype=jnp.float32)
        targets = jax.random.normal(k2, (B, S, D), dtype=jnp.float32)
        mask = (jax.random.uniform(k3, (B, S)) > 0.3).astype(jnp.float32)

        for loss_type in loss_types:
            for reduction in ("mean", "sum", "none"):
                for m in (mask, None):
                    out = reconstruction_loss(predictions, targets, m,
                                              loss_type=loss_type,
                                              reduction=reduction)
                    out = jax.block_until_ready(out)
                    ref = _reference_loss(predictions, targets, m, loss_type, reduction)
                    if not jnp.allclose(out, ref, atol=1e-5, rtol=1e-5):
                        ok = False

    print("KERNEL_OK" if ok else "KERNEL_MISMATCH")
</pallas_src>

<mosaic_0001>
module attributes {stable_mosaic.version = 11 : i64} {
  func.func @_masked_sum_kernel(%arg0: i32, %arg1: memref<8x32xf32, #tpu.memory_space<vmem>>, %arg2: memref<8x32xf32, #tpu.memory_space<vmem>>, %arg3: memref<8x1xf32, #tpu.memory_space<vmem>>, %arg4: memref<8x128xf32, #tpu.memory_space<vmem>>) attributes {dimension_semantics = [#tpu.dimension_semantics<parallel>], iteration_bounds = array<i64: 2>, scalar_prefetch = 0 : i64, scratch_operands = 0 : i64, tpu.core_type = #tpu.core_type<tc>, window_params = [{transform_indices = @transform_0, window_bounds = array<i64: 8, 32>}, {transform_indices = @transform_1, window_bounds = array<i64: 8, 32>}, {transform_indices = @transform_2, window_bounds = array<i64: 8, 1>}, {transform_indices = @transform_3, window_bounds = array<i64: 8, 128>}]} {
    %cst = arith.constant 0.000000e+00 : f32
    %0 = vector.broadcast %cst : f32 to vector<8x32xf32>
    %c0_i32 = arith.constant 0 : i32
    %c8_i32 = arith.constant 8 : i32
    %1 = arith.muli %c0_i32, %c8_i32 : i32
    %2 = tpu.assume_multiple %1, 8 : i32
    %3 = arith.index_cast %2 : i32 to index
    %c0 = arith.constant 0 : index
    %4 = vector.load %arg1[%3, %c0] : memref<8x32xf32, #tpu.memory_space<vmem>>, vector<8x32xf32>
    %5 = arith.index_cast %2 : i32 to index
    %c0_0 = arith.constant 0 : index
    %6 = vector.load %arg2[%5, %c0_0] : memref<8x32xf32, #tpu.memory_space<vmem>>, vector<8x32xf32>
    %7 = arith.subf %4, %6 : vector<8x32xf32>
    %8 = arith.mulf %7, %7 : vector<8x32xf32>
    %9 = arith.index_cast %2 : i32 to index
    %c0_1 = arith.constant 0 : index
    %10 = vector.load %arg3[%9, %c0_1] : memref<8x1xf32, #tpu.memory_space<vmem>>, vector<8x1xf32>
    %11 = vector.broadcast %10 : vector<8x1xf32> to vector<8x32xf32>
    %12 = arith.mulf %8, %11 : vector<8x32xf32>
    %13 = arith.addf %0, %12 : vector<8x32xf32>
    %c1_i32 = arith.constant 1 : i32
    %cst_2 = arith.constant 0.000000e+00 : f32
    %14 = vector.broadcast %cst_2 : f32 to vector<8x128xf32>
    %c0_3 = arith.constant 0 : index
    %c0_4 = arith.constant 0 : index
    %15 = vector.load %arg4[%c0_3, %c0_4] : memref<8x128xf32, #tpu.memory_space<vmem>>, vector<8x128xf32>
    tpu.vector_store %arg4[%c0_3, %c0_4], %14 {strides = array<i32>} : memref<8x128xf32, #tpu.memory_space<vmem>>, vector<8x128xf32>,
    %c0_5 = arith.constant 0 : index
    %c0_6 = arith.constant 0 : index
    %16 = vector.load %arg4[%c0_5, %c0_6] : memref<8x128xf32, #tpu.memory_space<vmem>>, vector<8x32xf32>
    tpu.vector_store %arg4[%c0_5, %c0_6], %13 {strides = array<i32>} : memref<8x128xf32, #tpu.memory_space<vmem>>, vector<8x32xf32>,
    return
  }
  func.func @transform_0(%arg0: i32) -> (i32, i32) {
    %c0_i32 = arith.constant 0 : i32
    %c0_i32_0 = arith.constant 0 : i32
    return %arg0, %c0_i32 : i32, i32
  }
  func.func @transform_1(%arg0: i32) -> (i32, i32) {
    %c0_i32 = arith.constant 0 : i32
    %c0_i32_0 = arith.constant 0 : i32
    return %arg0, %c0_i32 : i32, i32
  }
  func.func @transform_2(%arg0: i32) -> (i32, i32) {
    %c0_i32 = arith.constant 0 : i32
    %c0_i32_0 = arith.constant 0 : i32
    return %arg0, %c0_i32 : i32, i32
  }
  func.func @transform_3(%arg0: i32) -> (i32, i32) {
    %c0_i32 = arith.constant 0 : i32
    %c0_i32_0 = arith.constant 0 : i32
    return %arg0, %c0_i32 : i32, i32
  }
}

</mosaic_0001>

<bundles_post_ra>
// kernel: tpu_custom_call.1
= control target key start
LH: loop header
LB: loop body
LE: loop exit
PB: predicated region body
PF: predicated region fallthrough
CT: control target
= control target key end

     0   :  { %8 = vsyncpa [#allocation3], 0  ;;  %s665_s0 = inlined_call_operand.vmem [shape: f32[16,32], index: 0, kind: input, shape index: {}]   ;;  %s666_s1 = inlined_call_operand.hbm [shape: f32[16,32], index: 1, kind: input, shape index: {}]   ;;  %s667_s2 = inlined_call_operand.vmem [shape: f32[16,1], index: 2, kind: input, shape index: {}]   ;;  %s668_s3 = inlined_call_operand.hbm [shape: f32[16,128], index: 3, kind: output, shape index: {}]  }
   0x1   :  { %10 = vsyncpa [#allocation3 + $0x1], 0 }
   0x2   :  { %11 = vsyncpa [#allocation4], 0 }
   0x3   :  { %13 = vsyncpa [#allocation4 + $0x1], 0  ;;  %s530_s12 = smov 0   ;;  %s532_s13 = smov 0  }
   0x4   :  { %s534_s14 = smov 0   ;;  %s536_s15 = smov 0  }
   0x5 LB: > { %s551_s16 = sadd.s32 4294967295, %s506_s15   ;;  %s347_s17 = sadd.s32 4294967294, %s506_s15   ;;  %s506_s15 = sphi %s536_s15, %s678_s15   ;;  %s502_s14 = sphi %s534_s14, %s677_s14   ;;  %s498_s13 = sphi %s532_s13, %s676_s13   ;;  %s494_s12 = sphi %s530_s12, %s675_s12  }
   0x6   : > { %s555_s18 = sadd.s32 1, %s506_s15   ;;  %s52_s19 = sadd.s32 1, %s502_s14 }
   0x7   : > { %s49_s20 = ssub.s32 %s506_s15, %s555_s18  ;;  %p59_p0 = scmp.ne.s32.totalorder %s502_s14, %s498_s13 }
   0x8   : > { %p50_p1 = scmp.eq.s32.totalorder %s49_s20, 0  ;;  %p60_p2 = scmp.eq.s32.totalorder %s506_s15, 0 }
   0x9   : > { %p65_p3 = scmp.ne.s32.totalorder %s498_s13, %s494_s12  ;;  %p66_p4 = scmp.eq.s32.totalorder %s551_s16, 0 }
   0xa   : > { %s567_s21 = scalar_select %p50_p1, %s502_s14, %s52_s19  }
   0xb   : > { %p569_p5 = por %p60_p2, %p59_p0  ;;  %p573_p6 = por %p66_p4, %p65_p3 }
   0xc   : > { %p115_p7 = scmp.eq.s32.totalorder %s551_s16, 1  ;;  %p121_p8 = scmp.eq.s32.totalorder %s347_s17, 1 }
   0xd   : > { %p373_p10 = scmp.lt.s32.totalorder %s506_s15, 2  ;;  %s148_s26 = sand.u32 1, %s502_s14  }
   0xe   : > { %p580_p11 = por %p115_p7, %p59_p0  ;;  %p584_p12 = por %p121_p8, %p65_p3 }
   0xf   : > { %s351_s27 = sshll.u32 %s506_s15, 3  ;;  %s350_s28 = sshll.u32 %s148_s26, 3 }
  0x10   : > { %s156_s4 = scalar_lea.hbm %s666_s1, %s351_s27  ;;  %s152_s6 = scalar_lea.vmem [#allocation2], %s350_s28 }
  0x11   : > { %s158_s5 = sshll.u32 %s156_s4, 4  ;;  %s160_s7 = sshll.u32 %s152_s6, 4  ;;  %s159_s5 = int_to_ptr.hbm [resolvable:$true] %s158_s5  ;;  %s161_s7 = int_to_ptr.vmem [resolvable:$true] %s160_s7 }
  0x12   : > { %p595_p13 = pnand %p373_p10, %p569_p5  ;;  %p352_p0 = scmp.ge.s32.totalorder %s506_s15, 1 }
  0x13   : > { %p172_p1 = scmp.lt.s32.totalorder %s506_s15, 3  ;;  %s149_s9 = scalar_lea.sflag [#allocation3], %s148_s26 }
  0x14   : > { %s410_s10 = sshra.s32 %s159_s5, 4  ;;  %p414_p3 = pneg %p595_p13  ;;  %s411_s10 = int_to_ptr.hbm [resolvable:$true] %s410_s10 }
  0x15   : > { %s412_s11 = scalar_lea.hbm %s411_s10, 8  ;;  %s417_s20 = scalar_lea.hbm %s666_s1, 16 }
  0x16   : > { %p413_p2 = scmp.ne.s32.totalorder %s411_s10, %s412_s11  ;;  %p418_p5 = scmp.lt.s32.totalorder %s411_s10, %s666_s1 }
  0x17   : > { %p419_p8 = scmp.lt.s32.totalorder %s417_s20, %s412_s11 }
  0x18   : > { %p415_p4 = pnand %p414_p3, %p413_p2 }
  0x19   : > { %p420_p10 = por %p419_p8, %p418_p5 }
  0x1a   : > { %p416_p7 = pneg %p415_p4 }
  0x1c   : > { %p421_p9 = pnand %p420_p10, %p416_p7 }
  0x1e   : > { %424 = shalt.err (!%p421_p9)
}
  0x1f   : > { %368 = dma.hbm_to_vmem [thread:$0]  (!%p595_p13), %s159_s5, 128, %s161_s7, %s149_s9  }
  0x20   : > { %p173_p2 = pnand %p352_p0, %p172_p1 }
  0x21   : > { %s616_s26 = sand.u32 (!%p173_p2), 1, %s498_s13  }
  0x22   : > { %176 = sbr.rel (%p173_p2) target bundleno = 167 (0xa7), region = 32  ;;  %s353_s28 = sshll.u32 (!%p173_p2), %s616_s26, 3 }
  0x23   : > { %s179_s29 = scalar_lea.sflag (!%p173_p2), [#allocation3], %s616_s26  ;;  %s182_s30 = scalar_lea.vmem (!%p173_p2), [#allocation2], %s353_s28 }
  0x27   : > { %485 = dma.done.wait (%p573_p6), %s179_s29, 128  }
  0x28   : > { %487 = vsyncadd (%p573_p6), %s179_s29, 4294967168  ;;  %p214_p9 = scmp.lt.s32.totalorder %s551_s16, 1  ;;  %v508_v0 = vmov 0   ;;  %s213_s9 = scalar_lea.vmem [#allocation5], %s353_s28  ;;  %v509_v2 = vmov 0.0   ;;  %v223_v4 = vld [vmem:[%s182_s30] sm:$0xff] }
  0x29   : > { %409 = vset.pattern.permute.xlu0 %v508_v0  ;;  %234 = vst [vmem:[%s213_s9] sm:$0xff] %v509_v2  ;;  %s358_s17 = sshll.u32 %s551_s16, 3  ;;  %s250_s27 = sshll.u32 %s213_s9, 4  ;;  %vm235_vm0 = vcmask 261120   ;;  %s251_s27 = int_to_ptr.vmem [resolvable:$true] %s250_s27 }
  0x2a   : > { %s215_s4 = scalar_select %p214_p9, %s551_s16, 1 }
  0x2b   : > { %s248_s22 = scalar_lea.hbm %s668_s3, %s358_s17  ;;  %s238_s28 = scalar_lea.sflag [#allocation4], %s616_s26 }
  0x2c   : > { %s355_s5 = sshll.u32 %s215_s4, 3  ;;  %s252_s29 = sshll.u32 %s248_s22, 4  ;;  %s253_s29 = int_to_ptr.hbm [resolvable:$true] %s252_s29 }
  0x2d   : > { %s221_s8 = scalar_lea.vmem %s667_s2, %s355_s5  ;;  %s217_s11 = scalar_lea.vmem %s665_s0, %s355_s5 }
  0x2e   : > { %v226_v1 = vld [vmem:[%s221_s8] sm:$0xff]  ;;  %s454_s4 = sshra.s32 %s253_s29, 4  ;;  %s460_s6 = scalar_lea.hbm %s668_s3, 16  ;;  %s455_s4 = int_to_ptr.hbm [resolvable:$true] %s454_s4 }
  0x2f   : > { %229 = vperm.xlu0 %409, %v226_v1   ;;  %v222_v3 = vld [vmem:[%s217_s11] sm:$0xff]  ;;  %s456_s30 = scalar_lea.hbm %s455_s4, 8  ;;  %p461_p1 = scmp.lt.s32.totalorder %s455_s4, %s668_s3 }
  0x30   : > { %v224_v5 = vsub.f32 %v222_v3, %v223_v4  ;;  %p457_p6 = scmp.ne.s32.totalorder %s455_s4, %s456_s30  ;;  %p462_p3 = scmp.lt.s32.totalorder %s460_s6, %s456_s30 }
  0x32   : > { %v225_v6 = vmul.f32 %v224_v5, %v224_v5  ;;  %p458_p13 = pnand %p457_p6, %p580_p11  ;;  %p463_p4 = por %p462_p3, %p461_p1 }
  0x34   : > { %p459_p0 = pneg %p458_p13 }
  0x36   : > { %p464_p7 = pnand %p463_p4, %p459_p0 }
  0xa1   : > { %v230_v7 = vpop.permute.xlu0 %229 }
  0xa2   : > { %v232_v8 = vmul.f32 %v230_v7, %v225_v6 }
  0xa4   : > { %236 = vst.msk [vmem:[%s213_s9] sm:$0xff] %vm235_vm0, %v232_v8 }
  0xa5   : > { %467 = shalt.err (!%p464_p7)
}
  0xa6   : > { %363 = dma.vmem_to_hbm [thread:$0]  (%p580_p11), %s251_s27, 128, %s253_s29, %s238_s28  }
  0xa7 PF: > { %s264_s26 = sand.u32 1, %s494_s12   ;;  %p674_p5 = scmp.ge.s32.totalorder %s506_s15, 2 }
  0xa8   : > { %s265_s9 = scalar_lea.sflag [#allocation4], %s264_s26 }
  0xa9   : > { %p370_p8 = pnand %p674_p5, %p584_p12 }
  0xab   : > { %p371_p10 = pneg %p370_p8 }
  0xad   : > { %489 = dma.done.wait (%p371_p10), %s265_s9, 128  }
  0xae   : > { %491 = vsyncadd (%p371_p10), %s265_s9, 4294967168  ;;  %p16_p2 = scmp.ge.s32.totalorder %s555_s18, 4   ;;  %s675_s12 = smov %s498_s13 }
  0xaf   : > { %s676_s13 = smov %s502_s14  ;;  %s677_s14 = smov %s567_s21 }
  0xb0   : > { %s678_s15 = smov %s555_s18  ;;  %18 = sbr.rel (!%p16_p2) target bundleno = 5 (0x5), region = 83 }
  0xb5   :  { %271 = vsyncpa [#allocation3], 1 }
  0xb6   :  { %273 = vsyncpa [#allocation3 + $0x1], 1 }
  0xb7   :  { %274 = vsyncpa [#allocation4], 1 }
  0xb8   :  { %276 = vsyncpa [#allocation4 + $0x1], 1 }

</bundles_post_ra>
